<compile_context>
chip_gen: v7x
topology: tpu7x:2x2x1
jax: 0.10.0
libtpu: 0.0.40
codegen_flags: <defaults>
</compile_context>

<pallas_src>
import functools

import jax
import jax.numpy as jnp
from jax import lax
from jax.experimental import pallas as pl
from jax.experimental.pallas import tpu as pltpu


def _round_up(x, m):
    return (x + m - 1) // m * m


def _dice_kernel(x_ref, t_ref, out_ref, inter_ref, card_ref, *,
                 smooth, hw_valid, hw_pad, tile_hw):
    hw_idx = pl.program_id(1)

    @pl.when(hw_idx == 0)
    def _():
        inter_ref[...] = jnp.zeros_like(inter_ref)
        card_ref[...] = jnp.zeros_like(card_ref)

    x = x_ref[0].astype(jnp.float32)      # (C, TILE_HW) logits, cast in-kernel
    t = t_ref[0]                          # (1, TILE_HW) int32 labels
    C = x.shape[0]

    # softmax over the class (sublane) axis == torch.softmax(inputs, dim=1)
    m = jnp.max(x, axis=0, keepdims=True)
    e = jnp.exp(x - m)
    p = e / jnp.sum(e, axis=0, keepdims=True)

    # Mask out spatial padding (only emitted when padding actually exists).
    if hw_pad != hw_valid:
        col = hw_idx * tile_hw + lax.broadcasted_iota(jnp.int32, (1, tile_hw), 1)
        p = jnp.where(col < hw_valid, p, 0.0)

    # One-hot match mask via iota compare; padded columns carry label == C so
    # they never match. No f32 one-hot / (p + one_hot) temporaries.
    class_ids = lax.broadcasted_iota(jnp.int32, (C, tile_hw), 0)
    onehot = class_ids == t               # bool (C, TILE_HW)

    inter_tile = jnp.sum(jnp.where(onehot, p, 0.0), axis=1)                 # (C,)
    card_tile = jnp.sum(p, axis=1) + jnp.sum(onehot.astype(jnp.float32), axis=1)

    inter_ref[...] += inter_tile.reshape(1, C)
    card_ref[...] += card_tile.reshape(1, C)

    @pl.when(hw_idx == pl.num_programs(1) - 1)
    def _():
        dice = (2.0 * inter_ref[...] + smooth) / (card_ref[...] + smooth)   # (1, C)
        out_ref[0] = dice


def dice_loss(inputs, targets, smooth=1e-5):
    B, C, H, W = inputs.shape
    HW = H * W

    # Tile the spatial axis: multiple of 128, capped at 2048. Even at C ~ 24
    # padded sublanes and bf16/f32 this is a few hundred KiB double-buffered,
    # comfortably under the v7x 64 MiB VMEM.
    tile_hw = min(2048, _round_up(HW, 128))
    hw_pad = _round_up(HW, tile_hw)
    n_hw = hw_pad // tile_hw

    x = inputs.reshape(B, C, HW)                       # native dtype, no upcast
    t = targets.reshape(B, 1, HW).astype(jnp.int32)
    if hw_pad != HW:
        x = jnp.pad(x, ((0, 0), (0, 0), (0, hw_pad - HW)))
        # out-of-range label -> one-hot never matches on padded columns
        t = jnp.pad(t, ((0, 0), (0, 0), (0, hw_pad - HW)), constant_values=C)

    dice = pl.pallas_call(
        functools.partial(_dice_kernel, smooth=float(smooth),
                          hw_valid=HW, hw_pad=hw_pad, tile_hw=tile_hw),
        out_shape=jax.ShapeDtypeStruct((B, 1, C), jnp.float32),
        grid=(B, n_hw),
        in_specs=[
            pl.BlockSpec((1, C, tile_hw), lambda b, h: (b, 0, h)),
            pl.BlockSpec((1, 1, tile_hw), lambda b, h: (b, 0, h)),
        ],
        # Per-batch-row output block, written once at the last HW tile.
        out_specs=pl.BlockSpec((1, 1, C), lambda b, h: (b, 0, 0)),
        scratch_shapes=[
            pltpu.VMEM((1, C), jnp.float32),   # intersection accumulator
            pltpu.VMEM((1, C), jnp.float32),   # cardinality accumulator
        ],
        compiler_params=pltpu.CompilerParams(
            dimension_semantics=("parallel", "arbitrary")),
    )(x, t)

    # final scalar reduction (glue): loss = 1 - mean(dice_score)
    return 1.0 - jnp.mean(dice)


def _reference_dice_loss(inputs, targets, smooth=1e-5):
    C = inputs.shape[1]
    x = inputs.astype(jnp.float32)
    one_hot = jax.nn.one_hot(targets, C, dtype=jnp.float32).transpose(0, 3, 1, 2)
    p = jax.nn.softmax(x, axis=1)
    intersection = jnp.sum(p * one_hot, axis=(2, 3))
    cardinality = jnp.sum(p + one_hot, axis=(2, 3))
    dice = (2.0 * intersection + smooth) / (cardinality + smooth)
    return 1.0 - jnp.mean(dice)


if __name__ == "__main__":
    key = jax.random.PRNGKey(0)
    kx, kt, kx2, kt2 = jax.random.split(key, 4)

    # Primary test: f32 logits, spatial size a multiple of the lane tile.
    B, C, H, W = 2, 4, 16, 16
    inputs = jax.random.normal(kx, (B, C, H, W), dtype=jnp.float32)
    targets = jax.random.randint(kt, (B, H, W), 0, C, dtype=jnp.int32)

    loss = dice_loss(inputs, targets)
    jax.block_until_ready(loss)
    ref = _reference_dice_loss(inputs, targets)
    assert jnp.allclose(loss, ref, atol=1e-5, rtol=1e-5), (loss, ref)

    # Secondary test: bf16 logits (native-dtype DMA) + spatial size that needs
    # padding/masking (10x10 = 100 -> padded to 128 lanes).
    B2, C2, H2, W2 = 2, 3, 10, 10
    inputs2 = jax.random.normal(kx2, (B2, C2, H2, W2), dtype=jnp.float32)
    inputs2 = inputs2.astype(jnp.bfloat16)
    targets2 = jax.random.randint(kt2, (B2, H2, W2), 0, C2, dtype=jnp.int32)

    loss2 = dice_loss(inputs2, targets2)
    jax.block_until_ready(loss2)
    ref2 = _reference_dice_loss(inputs2, targets2)
    assert jnp.allclose(loss2, ref2, atol=1e-5, rtol=1e-5), (loss2, ref2)

    print("KERNEL_OK")
</pallas_src>

<mosaic_0001>
module attributes {stable_mosaic.version = 11 : i64} {
  func.func @_dice_kernel(%arg0: i32, %arg1: i32, %arg2: memref<1x4x256xf32, #tpu.memory_space<vmem>>, %arg3: memref<1x1x256xi32, #tpu.memory_space<vmem>>, %arg4: memref<1x1x4xf32, #tpu.memory_space<vmem>>, %arg5: memref<1x4xf32, #tpu.memory_space<vmem>>, %arg6: memref<1x4xf32, #tpu.memory_space<vmem>>) attributes {dimension_semantics = [#tpu.dimension_semantics<parallel>, #tpu.dimension_semantics<arbitrary>], iteration_bounds = array<i64: 2, 1>, scalar_prefetch = 0 : i64, scratch_operands = 2 : i64, tpu.core_type = #tpu.core_type<tc>, window_params = [{transform_indices = @transform_0, window_bounds = array<i64: 1, 4, 256>}, {transform_indices = @transform_1, window_bounds = array<i64: 1, 1, 256>}, {transform_indices = @transform_2, window_bounds = array<i64: 1, 1, 4>}]} {
    %c0_i32 = arith.constant 0 : i32
    %0 = arith.cmpi eq, %arg1, %c0_i32 : i32
    %1 = arith.extui %0 : i1 to i32
    %c0_i32_0 = arith.constant 0 : i32
    %2 = arith.cmpi ne, %1, %c0_i32_0 : i32
    scf.if %2 {
      %cst_21 = arith.constant 0.000000e+00 : f32
      %38 = vector.broadcast %cst_21 : f32 to vector<1x4xf32>
      %c0_22 = arith.constant 0 : index
      %c0_23 = arith.constant 0 : index
      %39 = vector.load %arg5[%c0_22, %c0_23] : memref<1x4xf32, #tpu.memory_space<vmem>>, vector<1x4xf32>
      tpu.vector_store %arg5[%c0_22, %c0_23], %38 {strides = array<i32>} : memref<1x4xf32, #tpu.memory_space<vmem>>, vector<1x4xf32>,
      %cst_24 = arith.constant 0.000000e+00 : f32
      %40 = vector.broadcast %cst_24 : f32 to vector<1x4xf32>
      %c0_25 = arith.constant 0 : index
      %c0_26 = arith.constant 0 : index
      %41 = vector.load %arg6[%c0_25, %c0_26] : memref<1x4xf32, #tpu.memory_space<vmem>>, vector<1x4xf32>
      tpu.vector_store %arg6[%c0_25, %c0_26], %40 {strides = array<i32>} : memref<1x4xf32, #tpu.memory_space<vmem>>, vector<1x4xf32>,
    } else {
    }
    %c0 = arith.constant 0 : index
    %c0_1 = arith.constant 0 : index
    %c0_2 = arith.constant 0 : index
    %3 = vector.load %arg2[%c0, %c0_1, %c0_2] : memref<1x4x256xf32, #tpu.memory_space<vmem>>, vector<1x4x256xf32>
    %4 = vector.shape_cast %3 : vector<1x4x256xf32> to vector<4x256xf32>
    %c0_3 = arith.constant 0 : index
    %c0_4 = arith.constant 0 : index
    %c0_5 = arith.constant 0 : index
    %5 = vector.load %arg3[%c0_3, %c0_4, %c0_5] : memref<1x1x256xi32, #tpu.memory_space<vmem>>, vector<1x1x256xi32>
    %6 = vector.shape_cast %5 : vector<1x1x256xi32> to vector<1x256xi32>
    %cst = arith.constant dense<0xFF800000> : vector<256xf32>
    %7 = vector.multi_reduction <maximumf>, %4, %cst [0] : vector<4x256xf32> to vector<256xf32>
    %8 = vector.shape_cast %7 : vector<256xf32> to vector<1x256xf32>
    %9 = vector.broadcast %8 : vector<1x256xf32> to vector<4x256xf32>
    %10 = arith.subf %4, %9 : vector<4x256xf32>
    %11 = math.exp %10 : vector<4x256xf32>
    %cst_6 = arith.constant dense<0.000000e+00> : vector<256xf32>
    %12 = vector.multi_reduction <add>, %11, %cst_6 [0] : vector<4x256xf32> to vector<256xf32>
    %13 = vector.shape_cast %12 : vector<256xf32> to vector<1x256xf32>
    %14 = vector.broadcast %13 : vector<1x256xf32> to vector<4x256xf32>
    %15 = arith.divf %11, %14 : vector<4x256xf32>
    %16 = tpu.iota {dimensions = array<i32: 0>} : vector<4x256xi32>
    %17 = vector.broadcast %6 : vector<1x256xi32> to vector<4x256xi32>
    %18 = arith.cmpi eq, %16, %17 : vector<4x256xi32>
    %cst_7 = arith.constant 0.000000e+00 : f32
    %19 = vector.broadcast %cst_7 : f32 to vector<4x256xf32>
    %20 = arith.select %18, %15, %19 : vector<4x256xi1>, vector<4x256xf32>
    %cst_8 = arith.constant dense<0.000000e+00> : vector<4xf32>
    %21 = vector.multi_reduction <add>, %20, %cst_8 [1] : vector<4x256xf32> to vector<4xf32>
    %cst_9 = arith.constant dense<0.000000e+00> : vector<4xf32>
    %22 = vector.multi_reduction <add>, %15, %cst_9 [1] : vector<4x256xf32> to vector<4xf32>
    %23 = arith.extui %18 : vector<4x256xi1> to vector<4x256xi32>
    %24 = arith.sitofp %23 : vector<4x256xi32> to vector<4x256xf32>
    %cst_10 = arith.constant dense<0.000000e+00> : vector<4xf32>
    %25 = vector.multi_reduction <add>, %24, %cst_10 [1] : vector<4x256xf32> to vector<4xf32>
    %26 = arith.addf %22, %25 : vector<4xf32>
    %c0_11 = arith.constant 0 : index
    %c0_12 = arith.constant 0 : index
    %27 = vector.load %arg5[%c0_11, %c0_12] : memref<1x4xf32, #tpu.memory_space<vmem>>, vector<1x4xf32>
    %28 = vector.shape_cast %21 : vector<4xf32> to vector<1x4xf32>
    %29 = arith.addf %27, %28 : vector<1x4xf32>
    %c0_13 = arith.constant 0 : index
    %c0_14 = arith.constant 0 : index
    %30 = vector.load %arg5[%c0_13, %c0_14] : memref<1x4xf32, #tpu.memory_space<vmem>>, vector<1x4xf32>
    tpu.vector_store %arg5[%c0_13, %c0_14], %29 {strides = array<i32>} : memref<1x4xf32, #tpu.memory_space<vmem>>, vector<1x4xf32>,
    %c0_15 = arith.constant 0 : index
    %c0_16 = arith.constant 0 : index
    %31 = vector.load %arg6[%c0_15, %c0_16] : memref<1x4xf32, #tpu.memory_space<vmem>>, vector<1x4xf32>
    %32 = vector.shape_cast %26 : vector<4xf32> to vector<1x4xf32>
    %33 = arith.addf %31, %32 : vector<1x4xf32>
    %c0_17 = arith.constant 0 : index
    %c0_18 = arith.constant 0 : index
    %34 = vector.load %arg6[%c0_17, %c0_18] : memref<1x4xf32, #tpu.memory_space<vmem>>, vector<1x4xf32>
    tpu.vector_store %arg6[%c0_17, %c0_18], %33 {strides = array<i32>} : memref<1x4xf32, #tpu.memory_space<vmem>>, vector<1x4xf32>,
    %c0_i32_19 = arith.constant 0 : i32
    %35 = arith.cmpi eq, %arg1, %c0_i32_19 : i32
    %36 = arith.extui %35 : i1 to i32
    %c0_i32_20 = arith.constant 0 : i32
    %37 = arith.cmpi ne, %36, %c0_i32_20 : i32
    scf.if %37 {
      %c0_21 = arith.constant 0 : index
      %c0_22 = arith.constant 0 : index
      %38 = vector.load %arg5[%c0_21, %c0_22] : memref<1x4xf32, #tpu.memory_space<vmem>>, vector<1x4xf32>
      %cst_23 = arith.constant 2.000000e+00 : f32
      %39 = vector.broadcast %cst_23 : f32 to vector<1x4xf32>
      %40 = arith.mulf %39, %38 : vector<1x4xf32>
      %cst_24 = arith.constant 9.99999974E-6 : f32
      %41 = vector.broadcast %cst_24 : f32 to vector<1x4xf32>
      %42 = arith.addf %40, %41 : vector<1x4xf32>
      %c0_25 = arith.constant 0 : index
      %c0_26 = arith.constant 0 : index
      %43 = vector.load %arg6[%c0_25, %c0_26] : memref<1x4xf32, #tpu.memory_space<vmem>>, vector<1x4xf32>
      %cst_27 = arith.constant 9.99999974E-6 : f32
      %44 = vector.broadcast %cst_27 : f32 to vector<1x4xf32>
      %45 = arith.addf %43, %44 : vector<1x4xf32>
      %46 = arith.divf %42, %45 : vector<1x4xf32>
      %c0_28 = arith.constant 0 : index
      %c0_29 = arith.constant 0 : index
      %c0_30 = arith.constant 0 : index
      %47 = vector.load %arg4[%c0_28, %c0_29, %c0_30] : memref<1x1x4xf32, #tpu.memory_space<vmem>>, vector<1x1x4xf32>
      %48 = vector.shape_cast %47 : vector<1x1x4xf32> to vector<1x4xf32>
      %49 = vector.shape_cast %46 : vector<1x4xf32> to vector<1x1x4xf32>
      tpu.vector_store %arg4[%c0_28, %c0_29, %c0_30], %49 {strides = array<i32>} : memref<1x1x4xf32, #tpu.memory_space<vmem>>, vector<1x1x4xf32>,
    } else {
    }
    return
  }
  func.func @transform_0(%arg0: i32, %arg1: i32) -> (i32, i32, i32) {
    %c0_i32 = arith.constant 0 : i32
    %c0_i32_0 = arith.constant 0 : i32
    return %arg0, %c0_i32, %arg1 : i32, i32, i32
  }
  func.func @transform_1(%arg0: i32, %arg1: i32) -> (i32, i32, i32) {
    %c0_i32 = arith.constant 0 : i32
    %c0_i32_0 = arith.constant 0 : i32
    return %arg0, %c0_i32, %arg1 : i32, i32, i32
  }
  func.func @transform_2(%arg0: i32, %arg1: i32) -> (i32, i32, i32) {
    %c0_i32 = arith.constant 0 : i32
    %c0_i32_0 = arith.constant 0 : i32
    %c0_i32_1 = arith.constant 0 : i32
    return %arg0, %c0_i32, %c0_i32_0 : i32, i32, i32
  }
}

</mosaic_0001>

<bundles_post_ra>
// kernel: tpu_custom_call.1
= control target key start
LH: loop header
LB: loop body
LE: loop exit
PB: predicated region body
PF: predicated region fallthrough
CT: control target
= control target key end

     0   :  { %7 = vsyncpa [#allocation5], 0  ;;  %s1089_s0 = inlined_call_operand.hbm [shape: f32[2,4,256], index: 0, kind: input, shape index: {}]   ;;  %s1090_s1 = inlined_call_operand.hbm [shape: s32[2,1,256], index: 1, kind: input, shape index: {}]   ;;  %s1091_s2 = inlined_call_operand.hbm [shape: f32[2,1,4], index: 2, kind: output, shape index: {}]  }
   0x1   :  { %9 = vsyncpa [#allocation5 + $0x1], 0 }
   0x2   :  { %10 = vsyncpa [#allocation8], 0 }
   0x3   :  { %12 = vsyncpa [#allocation8 + $0x1], 0 }
   0x4   :  { %13 = vsyncpa [#allocation6], 0 }
   0x5   :  { %15 = vsyncpa [#allocation6 + $0x1], 0  ;;  %s843_s9 = smov 0   ;;  %s845_s10 = smov 0  }
   0x6   :  { %s847_s11 = smov 0   ;;  %s849_s12 = smov 0  }
   0x7   :  { %s851_s13 = smov 0   ;;  %s853_s14 = smov 0  }
   0x8 LB: > { %s575_s15 = sadd.s32 4294967295, %s820_s14   ;;  %s576_s16 = sadd.s32 4294967294, %s820_s14   ;;  %s820_s14 = sphi %s853_s14, %s21_s14   ;;  %s816_s13 = sphi %s851_s13, %s1111_s13   ;;  %s812_s12 = sphi %s849_s12, %s1110_s12   ;;  %s808_s11 = sphi %s847_s11, %s1109_s11   ;;  %s804_s10 = sphi %s845_s10, %s1108_s10   ;;  %s800_s9 = sphi %s843_s9, %s1107_s9  }
   0x9   : > { %s33_s17 = sadd.s32 1, %s816_s13  ;;  %s42_s18 = sadd.s32 1, %s808_s11 }
   0xa   : > { %p35_p0 = scmp.ge.s32.totalorder %s33_s17, 2  ;;  %p49_p1 = scmp.ne.s32.totalorder %s808_s11, %s804_s10 }
   0xb   : > { %p50_p2 = scmp.eq.s32.totalorder %s820_s14, 0  ;;  %p55_p3 = scmp.ne.s32.totalorder %s804_s10, %s800_s9 }
   0xc   : > { %s1113_s17 = smov (%p35_p0, %s33_s17), 0  ;;  %p56_p5 = scmp.eq.s32.totalorder %s575_s15, 0 }
   0xd   : > { %p884_p4 = por %p50_p2, %p49_p1  ;;  %s37_s20 = ssub.s32 %s816_s13, %s1113_s17 }
   0xe   : > { %p107_p6 = scmp.eq.s32.totalorder %s575_s15, 1  ;;  %p40_p7 = scmp.eq.s32.totalorder %s37_s20, 0 }
   0xf   : > { %p890_p8 = por %p56_p5, %p55_p3  ;;  %p113_p10 = scmp.eq.s32.totalorder %s576_s16, 1 }
  0x10   : > { %p894_p9 = por %p107_p6, %p49_p1  ;;  %p612_p13 = scmp.lt.s32.totalorder %s820_s14, 2 }
  0x11   : > { %s1095_s21 = scalar_select %p890_p8, 1, 0 }
  0x12   : > { %s1096_s22 = scalar_select %p894_p9, 1, 0 }
  0x13   : > { %s899_s23 = scalar_select %p40_p7, %s808_s11, %s42_s18  }
  0x14   : > { %p901_p11 = por %p113_p10, %p55_p3  ;;  %s908_s25 = sand.u32 1, %s808_s11  }
  0x15   : > { %s579_s26 = sshll.u32 %s908_s25, 3  ;;  %s593_s27 = sshll.u32 %s816_s13, 7 }
  0x16   : > { %s1097_s24 = scalar_select %p901_p11, 1, 0 }
  0x17   : > { %s915_s30 = scalar_lea.hbm %s1089_s0, %s593_s27  ;;  %s137_s3 = scalar_lea.vmem [#allocation4], %s579_s26 }
  0x18   : > { %s147_s4 = sshll.u32 %s137_s3, 4  ;;  %p921_p0 = pnand %p612_p13, %p884_p4  ;;  %s917_s4 = int_to_ptr.vmem [resolvable:$true] %s147_s4 }
  0x19   : > { %s134_s6 = scalar_lea.sflag [#allocation5], %s908_s25  ;;  %s674_s7 = scalar_lea.hbm %s915_s30, 128 }
  0x1a   : > { %p675_p3 = scmp.ne.s32.totalorder %s915_s30, %s674_s7  ;;  %p676_p5 = pneg %p921_p0 }
  0x1b   : > { %s679_s16 = scalar_lea.hbm %s1089_s0, 256  ;;  %p680_p4 = scmp.lt.u32.totalorder %s915_s30, %s1089_s0 }
  0x1c   : > { %p677_p6 = pnand %p676_p5, %p675_p3  ;;  %p681_p10 = scmp.lt.u32.totalorder %s679_s16, %s674_s7 }
  0x1d   : > { %p683_p12 = scmp.lt.u32.totalorder %s674_s7, %s915_s30 }
  0x1e   : > { %p678_p7 = pneg %p677_p6  ;;  %p682_p13 = por %p681_p10, %p680_p4 }
  0x20   : > { %p684_p1 = por %p683_p12, %p682_p13 }
  0x22   : > { %p685_p2 = pnand %p684_p1, %p678_p7 }
  0x24   : > { %688 = shalt.err (!%p685_p2)
}
  0x25   : > { %s689_s20 = scalar_lea.vmem %s917_s4, 128  ;;  %s822_s26 = smov [#allocation4]  }
  0x26   : > { %p690_p3 = scmp.ne.s32.totalorder %s917_s4, %s689_s20  ;;  %s694_s27 = sshll.u32 %s822_s26, 4  ;;  %s695_s27 = int_to_ptr.vmem [resolvable:$false] %s694_s27 }
  0x27   : > { %s696_s28 = scalar_lea.vmem %s695_s27, 256  ;;  %p697_p9 = scmp.lt.s32.totalorder %s917_s4, %s695_s27 }
  0x28   : > { %p692_p6 = pnand %p690_p3, %p676_p5  ;;  %p698_p4 = scmp.lt.s32.totalorder %s696_s28, %s689_s20 }
  0x2a   : > { %p693_p11 = pneg %p692_p6  ;;  %p699_p10 = por %p698_p4, %p697_p9 }
  0x2c   : > { %p700_p12 = pnand %p699_p10, %p693_p11 }
  0x2e   : > { %703 = shalt.err (!%p700_p12)
}
  0x2f   : > { %604 = dma.hbm_to_vmem [thread:$0]  (!%p921_p0), %s915_s30, 128, %s917_s4, %s134_s6  }
  0x30   : > { %p1099_p1 = scmp.lt.s32.totalorder %s820_s14, 3  ;;  %p1100_p2 = scmp.ge.s32.totalorder %s820_s14, 1 }
  0x31   : > { %s582_s3 = sshll.u32 %s908_s25, 1  ;;  %s594_s7 = sshll.u32 %s816_s13, 5 }
  0x32   : > { %p957_p7 = pnand %p1100_p2, %p1099_p1  ;;  %s966_s16 = scalar_lea.hbm %s1090_s1, %s594_s7 }
  0x33   : > { %s158_s18 = scalar_lea.vmem [#allocation7], %s582_s3  ;;  %s155_s30 = scalar_lea.sflag [#allocation8], %s908_s25 }
  0x34   : > { %s1101_s29 = scalar_select %p957_p7, 1, 0 }
  0x35   : > { %s168_s19 = sshll.u32 %s158_s18, 4  ;;  %s704_s4 = scalar_lea.hbm %s966_s16, 32  ;;  %s169_s19 = int_to_ptr.vmem [resolvable:$true] %s168_s19 }
  0x36   : > { %p705_p9 = scmp.ne.s32.totalorder %s966_s16, %s704_s4  ;;  %s709_s26 = scalar_lea.hbm %s1090_s1, 64 }
  0x37   : > { %p710_p3 = scmp.lt.u32.totalorder %s966_s16, %s1090_s1  ;;  %p711_p6 = scmp.lt.u32.totalorder %s709_s26, %s704_s4 }
  0x38   : > { %p707_p11 = pnand %p705_p9, %p676_p5  ;;  %p713_p10 = scmp.lt.u32.totalorder %s704_s4, %s966_s16 }
  0x39   : > { %p712_p4 = por %p711_p6, %p710_p3 }
  0x3a   : > { %p708_p13 = pneg %p707_p11 }
  0x3b   : > { %p714_p12 = por %p713_p10, %p712_p4 }
  0x3d   : > { %p715_p1 = pnand %p714_p12, %p708_p13 }
  0x3f   : > { %718 = shalt.err (!%p715_p1)
}
  0x40   : > { %s719_s25 = scalar_lea.vmem %s169_s19, 32  ;;  %s823_s3 = smov [#allocation7]  }
  0x41   : > { %p720_p2 = scmp.ne.s32.totalorder %s169_s19, %s719_s25  ;;  %s724_s7 = sshll.u32 %s823_s3, 4  ;;  %s725_s7 = int_to_ptr.vmem [resolvable:$false] %s724_s7 }
  0x42   : > { %s726_s8 = scalar_lea.vmem %s725_s7, 64  ;;  %p727_p8 = scmp.lt.s32.totalorder %s169_s19, %s725_s7 }
  0x43   : > { %p722_p9 = pnand %p720_p2, %p676_p5  ;;  %p728_p7 = scmp.lt.s32.totalorder %s726_s8, %s719_s25 }
  0x45   : > { %p723_p11 = pneg %p722_p9  ;;  %p729_p3 = por %p728_p7, %p727_p8 }
  0x47   : > { %p730_p6 = pnand %p729_p3, %p723_p11 }
  0x49   : > { %733 = shalt.err (!%p730_p6)
}
  0x4a   : > { %607 = dma.hbm_to_vmem [thread:$0]  (!%p921_p0), %s966_s16, 32, %s169_s19, %s155_s30  }
  0x4b   : > { %p1102_p13 = scmp.ne.s32.totalorder %s1101_s29, 0 }
  0x4c   : > { %s991_s15 = sand.u32 (!%p1102_p13), 1, %s804_s10   ;;  %p1103_p5 = scmp.ne.s32.totalorder (!%p1102_p13), %s1095_s21, 0 }
  0x4d   : > { %177 = sbr.rel (%p1102_p13) target bundleno = 487 (0x1e7), region = 28  ;;  %s586_s18 = sshll.u32 (!%p1102_p13), %s991_s15, 3 }
  0x4e   : > { %s180_s4 = scalar_lea.sflag (!%p1102_p13), [#allocation5], %s991_s15  ;;  %s183_s6 = scalar_lea.vmem (!%p1102_p13), [#allocation4], %s586_s18 }
  0x54   : > { %787 = dma.done.wait (%p1103_p5), %s180_s4, 128  }
  0x55   : > { %789 = vsyncadd (%p1103_p5), %s180_s4, 4294967168  ;;  %s587_s5 = sshll.u32 %s991_s15, 1  ;;  %s189_s29 = scalar_lea.sflag [#allocation8], %s991_s15 }
  0x56   : > { %s1001_s16 = scalar_lea.vmem [#allocation7], %s587_s5 }
  0x57   : > { %791 = dma.done.wait (%p1103_p5), %s189_s29, 32  }
  0x58   : > { %793 = vsyncadd (%p1103_p5), %s189_s29, 4294967264  ;;  %vm223_vm0 = vcmask 24576   ;;  %v824_v0 = vmov 0.0   ;;  %vm231_vm1 = vcmask 1043456   ;;  %v226_v1 = vld [vmem:[%s183_s6] sm:$0xff]  ;;  %v276_v33 = vlaneseq  ;;  %s590_s21 = sshll.u32 %s812_s12, 4 }
  0x59   : > { %224 = vst.msk [vmem:[#allocation2] sm:$0x1] %vm223_vm0, %v824_v0  ;;  %225 = vst.msk [vmem:[#allocation3] sm:$0x1] %vm223_vm0, %v824_v0  ;;  %v229_v2 = vcombine.high %v226_v1, %v226_v1  ;;  %v232_v3 = vsel %vm231_vm1, %v226_v1, -inf  ;;  %v825_v60 = vmov 0   ;;  %s1039_s27 = scalar_lea.hbm %s1091_s2, %s590_s21 }
  0x5a   : > { %v233_v4 = vrot.slane %v232_v3, 4  ;;  %v1014_v37 = vshrl.u32 %v276_v33, 7  ;;  %v227_v41 = vld [vmem:[%s1001_s16] sm:$0x3]  ;;  %665 = vset.pattern.permute.xlu1 %v825_v60  ;;  %666 = vset.pattern.permute.xlu0 %v825_v60  ;;  %v826_v61 = vmov 1966171168  }
  0x5b   : > { %v239_v5 = vsel %vm231_vm1, %v229_v2, -inf  ;;  %v334_v62 = vunpack.c.l.s4 %v826_v61  ;;  %s216_s19 = scalar_lea.vmem [#allocation9], %s991_s15  ;;  %s460_s28 = scalar_lea.sflag [#allocation6], %s991_s15 }
  0x5c   : > { %v234_v6 = vmax.f32 %v232_v3, %v233_v4  ;;  %v240_v7 = vrot.slane %v239_v5, 4  ;;  %v280_v39 = vsub.s32 0, %v1014_v37  ;;  %v284_v40 = vsub.s32 1, %v1014_v37  ;;  %s472_s30 = sshll.u32 %s216_s19, 4  ;;  %p1104_p0 = scmp.ne.s32.totalorder %s1096_s22, 0  ;;  %s1041_s30 = int_to_ptr.vmem [resolvable:$true] %s472_s30 }
  0x5d   : > { %v335_v2 = vunpack.c.0.s8 %v334_v62  ;;  %s734_s25 = scalar_lea.vmem %s1041_s30, 16  ;;  %s827_s12 = smov [#allocation9]  }
  0x5e   : > { %v235_v8 = vrot.slane %v234_v6, 2  ;;  %v241_v9 = vmax.f32 %v239_v5, %v240_v7  ;;  %v281_v42 = vrot.slane %v227_v41, %v280_v39  ;;  %v285_v43 = vrot.slane %v227_v41, %v284_v40  ;;  %p735_p8 = scmp.ne.s32.totalorder %s1041_s30, %s734_s25  ;;  %s738_s3 = sshll.u32 %s827_s12, 4  ;;  %s739_s3 = int_to_ptr.vmem [resolvable:$false] %s738_s3 }
  0x5f   : > { %s740_s7 = scalar_lea.vmem %s739_s3, 32  ;;  %p741_p10 = scmp.lt.s32.totalorder %s1041_s30, %s739_s3 }
  0x60   : > { %v236_v10 = vmax.f32 %v234_v6, %v235_v8  ;;  %v242_v11 = vrot.slane %v241_v9, 2  ;;  %vm286_vm2 = vcmp.eq.s32.totalorder %v1014_v37, %v281_v42  ;;  %vm287_vm3 = vcmp.eq.s32.totalorder %v1014_v37, %v285_v43  ;;  %p736_p7 = pnand %p735_p8, %p1104_p0  ;;  %p742_p12 = scmp.lt.s32.totalorder %s740_s7, %s734_s25 }
  0x61   : > { %v588_v46 = vsel %vm286_vm2, 1.0, %v824_v0  ;;  %v589_v47 = vsel %vm287_vm3, 1.0, %v824_v0  ;;  %v325_v0 = vsub.s32 2, %v1014_v37 }
  0x62   : > { %v237_v12 = vrot.slane %v236_v10, 1  ;;  %v243_v13 = vmax.f32 %v241_v9, %v242_v11  ;;  %v307_v53 = vsel %vm231_vm1, %v588_v46, 0.0  ;;  %v308_v54 = vsel %vm231_vm1, %v589_v47, 0.0  ;;  %p737_p4 = pneg %p736_p7  ;;  %p743_p1 = por %p742_p12, %p741_p10 }
  0x63   : > { %v309_v59 = vadd.f32 %v308_v54, %v307_v53  ;;  %v338_v11 = vsub.s32 %v335_v2, %v1014_v37 }
  0x64   : > { %v238_v14 = vmax.f32 %v236_v10, %v237_v12  ;;  %v244_v15 = vrot.slane %v243_v13, 1  ;;  %p744_p2 = pnand %p743_p1, %p737_p4 }
  0x66   : > { %v245_v16 = vmax.f32 %v243_v13, %v244_v15 }
  0x68   : > { %v248_v17 = vcombine.low %v238_v14, %v245_v16 }
  0x6a   : > { %v250_v18 = vsub.f32 %v226_v1, %v248_v17  ;;  %v329_v1 = vsub.s32 3, %v1014_v37 }
  0x6c   : > { %v251_v19 = vmul.f32 1.442695, %v250_v18 }
  0x6e   : > { %668 = vpow2.f32 %v251_v19 }
  0x78   : > { %v669_v20 = vpop.eup %668 }
  0x79   : > { %v254_v21 = vcombine.high %v669_v20, %v669_v20  ;;  %v256_v22 = vsel %vm231_vm1, %v669_v20, 0.0 }
  0x7a   : > { %v257_v23 = vrot.slane %v256_v22, 4 }
  0x7b   : > { %v263_v24 = vsel %vm231_vm1, %v254_v21, 0.0 }
  0x7c   : > { %v258_v25 = vadd.f32 %v257_v23, %v256_v22  ;;  %v264_v26 = vrot.slane %v263_v24, 4 }
  0x7e   : > { %v259_v27 = vrot.slane %v258_v25, 2  ;;  %v265_v28 = vadd.f32 %v264_v26, %v263_v24 }
  0x80   : > { %v260_v29 = vadd.f32 %v259_v27, %v258_v25  ;;  %v266_v30 = vrot.slane %v265_v28, 2  ;;  %v359_v27 = vand.u32 127, %v276_v33 }
  0x82   : > { %v261_v31 = vrot.slane %v260_v29, 1  ;;  %v267_v32 = vadd.f32 %v266_v30, %v265_v28  ;;  %v362_v28 = vsub.s32 %v359_v27, %v1014_v37 }
  0x84   : > { %v262_v34 = vadd.f32 %v261_v31, %v260_v29  ;;  %v268_v35 = vrot.slane %v267_v32, 1 }
  0x86   : > { %v269_v36 = vadd.f32 %v268_v35, %v267_v32  ;;  %v313_v32 = vld [vmem:[#allocation2] sm:$0x1] }
  0x88   : > { %v272_v38 = vcombine.low %v262_v34, %v269_v36 }
  0x8a   : > { %670 = vrcp.f32 %v272_v38 }
  0x94   : > { %v671_v44 = vpop.eup %670 }
  0x95   : > { %v275_v45 = vmul.f32 %v671_v44, %v669_v20 }
  0x97   : > { %v289_v48 = vcombine.high %v275_v45, %v275_v45  ;;  %v298_v49 = vsel %vm231_vm1, %v275_v45, 0.0  ;;  %v291_v50 = vsel %vm286_vm2, %v275_v45, 0.0 }
  0x98   : > { %v293_v51 = vsel %vm231_vm1, %v291_v50, 0.0 }
  0x99   : > { %v299_v52 = vsel %vm231_vm1, %v289_v48, 0.0  ;;  %v292_v55 = vsel %vm287_vm3, %v289_v48, 0.0 }
  0x9a   : > { %v300_v56 = vadd.f32 %v299_v52, %v298_v49  ;;  %v294_v57 = vsel %vm231_vm1, %v292_v55, 0.0 }
  0x9b   : > { %v295_v58 = vadd.f32 %v294_v57, %v293_v51 }
  0x9c   : > { %301 = vadd.xlane.f32.xlu0 %v300_v56 }
  0x9d   : > { %296 = vadd.xlane.f32.xlu1 %v295_v58 }
  0xa0   : > { %310 = vadd.xlane.f32.xlu0 %v309_v59 }
 0x129   : > { %v302_v63 = vpop.xlane.xlu0 %301 }
 0x12a   : > { %v297_v3 = vpop.xlane.xlu1 %296 }
 0x12b   : > { %v318_v4 = vrot.slane %v297_v3, %v280_v39  ;;  %v322_v5 = vrot.slane %v297_v3, %v284_v40  ;;  %v326_v6 = vrot.slane %v297_v3, %v325_v0  ;;  %v330_v7 = vrot.slane %v297_v3, %v329_v1 }
 0x12d   : > { %v311_v8 = vpop.xlane.xlu0 %310  ;;  %v331_v9 = vcombine.low %v318_v4, %v322_v5  ;;  %v332_v10 = vcombine.low %v326_v6, %v330_v7 }
 0x12e   : > { %v312_v12 = vadd.f32 %v311_v8, %v302_v63 }
 0x12f   : > { %v339_v13 = vrot.slane %v331_v9, %v338_v11  ;;  %v346_v14 = vrot.slane %v332_v10, %v338_v11 }
 0x130   : > { %v387_v15 = vrot.slane %v312_v12, %v280_v39  ;;  %v391_v16 = vrot.slane %v312_v12, %v284_v40  ;;  %v395_v17 = vrot.slane %v312_v12, %v325_v0  ;;  %v399_v18 = vrot.slane %v312_v12, %v329_v1  ;;  %v382_v40 = vld [vmem:[#allocation3] sm:$0x1] }
 0x131   : > { %v347_v19 = vcombine.low %v339_v13, %v346_v14 }
 0x132   : > { %v400_v20 = vcombine.low %v387_v15, %v391_v16  ;;  %v401_v21 = vcombine.low %v395_v17, %v399_v18 }
 0x133   : > { %v354_v22 = vrot.slane %v347_v19, %v338_v11 }
 0x134   : > { %v408_v23 = vrot.slane %v400_v20, %v338_v11  ;;  %v415_v24 = vrot.slane %v401_v21, %v338_v11 }
 0x135   : > { %356 = vperm.xlu0 %666, %v354_v22  }
 0x136   : > { %v416_v25 = vcombine.low %v408_v23, %v415_v24 }
 0x138   : > { %v423_v26 = vrot.slane %v416_v25, %v338_v11 }
 0x13a   : > { %425 = vperm.xlu1 %665, %v423_v26  }
 0x1b4   : > { %v357_v29 = vpop.permute.xlu0 %356 }
 0x1b5   : > { %v363_v30 = vrot.slane %v357_v29, %v362_v28 }
 0x1b7   : > { %v370_v31 = vrot.slane %v363_v30, %v338_v11 }
 0x1b9   : > { %v426_v34 = vpop.permute.xlu1 %425  ;;  %v377_v35 = vrot.slane %v370_v31, %v338_v11 }
 0x1ba   : > { %v430_v36 = vrot.slane %v426_v34, %v362_v28 }
 0x1bb   : > { %v379_v38 = vadd.f32 %v377_v35, %v313_v32 }
 0x1bc   : > { %v437_v39 = vrot.slane %v430_v36, %v338_v11 }
 0x1bd   : > { %381 = vst.msk [vmem:[#allocation2] sm:$0x1] %vm223_vm0, %v379_v38 }
 0x1be   : > { %v444_v41 = vrot.slane %v437_v39, %v338_v11 }
 0x1c0   : > { %v446_v42 = vadd.f32 %v444_v41, %v382_v40 }
 0x1c2   : > { %447 = vst.msk [vmem:[#allocation3] sm:$0x1] %vm223_vm0, %v446_v42 }
 0x1c4   : > { %v451_v43 = vld [vmem:[#allocation2] sm:$0x1] }
 0x1c5   : > { %v452_v44 = vmul.f32 2.0, %v451_v43 }
 0x1c7   : > { %v453_v45 = vadd.f32 1e-05, %v452_v44 }
 0x1c9   : > { %v454_v33 = vld [vmem:[#allocation3] sm:$0x1] }
 0x1ca   : > { %v455_v37 = vadd.f32 1e-05, %v454_v33 }
 0x1cc   : > { %672 = vrcp.f32 %v455_v37 }
 0x1d6   : > { %v673_v46 = vpop.eup %672 }
 0x1d7   : > { %v457_v47 = vmul.f32 %v673_v46, %v453_v45 }
 0x1d9   : > { %458 = vst.msk [vmem:[%s216_s19] sm:$0x1] %vm223_vm0, %v457_v47 }
 0x1da   : > { %747 = shalt.err (!%p744_p2)
}
 0x1db   : > { %s748_s8 = scalar_lea.hbm %s1039_s27, 16  ;;  %s752_s4 = scalar_lea.hbm %s1091_s2, 32 }
 0x1dc   : > { %p749_p9 = scmp.ne.s32.totalorder %s1039_s27, %s748_s8  ;;  %p753_p6 = scmp.lt.u32.totalorder %s1039_s27, %s1091_s2 }
 0x1dd   : > { %p754_p13 = scmp.lt.u32.totalorder %s752_s4, %s748_s8  ;;  %p756_p8 = scmp.lt.u32.totalorder %s748_s8, %s1039_s27 }
 0x1de   : > { %p750_p11 = pnand %p749_p9, %p1104_p0 }
 0x1df   : > { %p755_p5 = por %p754_p13, %p753_p6 }
 0x1e0   : > { %p751_p3 = pneg %p750_p11 }
 0x1e1   : > { %p757_p7 = por %p756_p8, %p755_p5 }
 0x1e3   : > { %p758_p4 = pnand %p757_p7, %p751_p3 }
 0x1e5   : > { %761 = shalt.err (!%p758_p4)
}
 0x1e6   : > { %599 = dma.vmem_to_hbm [thread:$0]  (%p1104_p0), %s1041_s30, 16, %s1039_s27, %s460_s28  }
 0x1e7 PF: > { %s484_s29 = sand.u32 1, %s800_s9   ;;  %p1105_p10 = scmp.ne.s32.totalorder %s1097_s24, 0 }
 0x1e8   : > { %p1106_p12 = scmp.ge.s32.totalorder %s820_s14, 2  ;;  %s485_s16 = scalar_lea.sflag [#allocation6], %s484_s29 }
 0x1ea   : > { %p609_p1 = pnand %p1106_p12, %p1105_p10 }
 0x1ec   : > { %795 = dma.done.wait (!%p609_p1), %s485_s16, 16  }
 0x1ed   : > { %797 = vsyncadd (!%p609_p1), %s485_s16, 4294967280  ;;  %s21_s14 = sadd.s32 1, %s820_s14   ;;  %s1107_s9 = smov %s804_s10 }
 0x1ee   : > { %p18_p2 = scmp.ge.s32.totalorder %s21_s14, 4   ;;  %s1108_s10 = smov %s808_s11 }
 0x1ef   : > { %s1109_s11 = smov %s899_s23  ;;  %s1110_s12 = smov %s816_s13 }
 0x1f0   : > { %s1111_s13 = smov %s1113_s17  ;;  %20 = sbr.rel (!%p18_p2) target bundleno = 8 (0x8), region = 94 }
 0x1f7   :  { %489 = vsyncpa [#allocation5], 1 }
 0x1f8   :  { %491 = vsyncpa [#allocation5 + $0x1], 1 }
 0x1f9   :  { %492 = vsyncpa [#allocation8], 1 }
 0x1fa   :  { %494 = vsyncpa [#allocation8 + $0x1], 1 }
 0x1fb   :  { %495 = vsyncpa [#allocation6], 1 }
 0x1fc   :  { %497 = vsyncpa [#allocation6 + $0x1], 1 }

</bundles_post_ra>
